<compile_context>
chip_gen: v6e
topology: v6e:2x2x1
jax: 0.10.0
libtpu: 0.0.40
codegen_flags: <defaults>
</compile_context>

<pallas_src>
import math

import jax
import jax.numpy as jnp
from jax import lax
from jax.experimental import pallas as pl
from jax.experimental.pallas import tpu as pltpu


_INV_SQRT2 = 1.0 / math.sqrt(2.0)
_LANE = 128


def _cdiv(a, b):
    return -(-a // b)


def _round_up(a, b):
    return _cdiv(a, b) * b


def _gelu_exact(x):
    # nn.GELU() default is the exact (erf-based) GELU; computed in f32.
    return 0.5 * x * (1.0 + lax.erf(x * _INV_SQRT2))


# ----------------------------- kernels --------------------------------------


def mlp_kernel_resident(x_ref, wfc_ref, bfc_ref, wproj_ref, bproj_ref, o_ref):
    # Grid: (i = M tile [parallel],). Both weights are VMEM-resident
    # (grid-invariant BlockSpecs), so the whole MLP is one fused step.
    h = jnp.dot(x_ref[...], wfc_ref[...], preferred_element_type=jnp.float32)
    h = _gelu_exact(h + bfc_ref[...])
    y = jnp.dot(h.astype(wproj_ref.dtype), wproj_ref[...],
                preferred_element_type=jnp.float32)
    # TODO(synk): dropout is identity in eval mode / p=0; for training-mode
    # dropout use pltpu.prng_seed + pltpu.prng_random_bits here.
    o_ref[...] = (y + bproj_ref[...]).astype(o_ref.dtype)


def mlp_kernel_htiled(x_ref, wfc_ref, bfc_ref, wproj_ref, bproj_ref, o_ref,
                      acc_ref):
    # Grid: (i = M tile [parallel], h = hidden-dim chunk [arbitrary/reduction]).
    # acc_ref: (tm, C) f32 VMEM accumulator across the H axis.
    h_idx = pl.program_id(1)

    @pl.when(h_idx == 0)
    def _():
        acc_ref[...] = jnp.zeros_like(acc_ref)

    h = jnp.dot(x_ref[...], wfc_ref[...], preferred_element_type=jnp.float32)
    h = _gelu_exact(h + bfc_ref[...])
    acc_ref[...] += jnp.dot(h.astype(wproj_ref.dtype), wproj_ref[...],
                            preferred_element_type=jnp.float32)

    @pl.when(h_idx == pl.num_programs(1) - 1)
    def _():
        # TODO(synk): dropout is identity in eval mode / p=0.
        o_ref[...] = (acc_ref[...] + bproj_ref[...]).astype(o_ref.dtype)


# -------------------------- planning / weight prep ---------------------------


def _vmem_capacity_bytes():
    try:
        return int(pltpu.get_tpu_info().vmem_capacity_bytes)
    except Exception:
        return 64 * 1024 * 1024  # conservative: v7x per-TensorCore VMEM


def _chip_kind():
    try:
        return jax.devices()[0].device_kind.lower()
    except Exception:
        return ""


def plan_mlp(C, H, *, compute_dtype=jnp.bfloat16, force_path=None,
             th_override=None):
    """Choose kernel path + tile sizes from the per-generation VMEM budget."""
    cap = _vmem_capacity_bytes()
    budget = int(0.55 * cap)        # planning budget for live VMEM buffers
    vmem_limit = int(0.75 * cap)    # scoped limit handed to Mosaic (headroom kept)
    cbytes = int(jnp.dtype(compute_dtype).itemsize)
    obytes = 4                      # assume f32 output tiles (conservative)
    kind = _chip_kind()
    is_v5e = ("v5 lite" in kind) or ("v5e" in kind) or ("v5litepod" in kind)

    # v5e is already ~compute-bound at tm=256-512; v6e/v7x need ~640-768 rows of
    # x per weight-chunk fetch to cross the HBM/MXU roofline on the tiled path.
    tm_pref = 512 if is_v5e else 768
    if cbytes >= 4:                 # strict f32 path: halve tiles (2x bytes/elem)
        tm_pref = max(128, tm_pref // 2)

    Hp128 = _round_up(H, _LANE)
    tm_cands = [t for t in (tm_pref, 512, 384, 256, 128, 64) if t <= tm_pref]

    # ---- weight-resident fast path: both weights live in VMEM, no H loop.
    if force_path != "tiled":
        w_bytes = 2 * 2 * C * Hp128 * cbytes  # both weights, double-buffered (conservative)

        def resident_step(tm):
            return (2 * tm * C * cbytes            # x tile (double-buffered)
                    + 2 * tm * C * obytes          # output tile (double-buffered)
                    + tm * Hp128 * (4 + cbytes)    # f32 GELU intermediate + cast copy
                    + tm * C * 4)                  # f32 second-matmul result

        for tm in tm_cands:
            if w_bytes + resident_step(tm) <= budget:
                return dict(resident=True, H=H, Hp=Hp128, th=Hp128, tm_max=tm,
                            compute_dtype=compute_dtype, vmem_limit=vmem_limit)
        if force_path == "resident":
            raise ValueError("weights do not fit the VMEM budget for the resident path")

    # ---- H-tiled streaming path (weights streamed in (C,th) / (th,C) chunks).
    if th_override is not None:
        th_cands = [_round_up(th_override, _LANE)]
    else:
        th_cands = [t for t in (2048, 1024, 512, 256, 128) if t <= Hp128] or [Hp128]

    def tiled_step(tm, th):
        return (2 * tm * C * cbytes + 2 * tm * C * obytes + tm * C * 4
                + 2 * C * th * cbytes + 2 * th * C * cbytes
                + tm * th * (4 + cbytes))

    for th in th_cands:
        for tm in tm_cands:
            if tiled_step(tm, th) <= budget:
                return dict(resident=False, H=H, Hp=_round_up(H, th), th=th,
                            tm_max=tm, compute_dtype=compute_dtype,
                            vmem_limit=vmem_limit)
    th = th_cands[-1]
    return dict(resident=False, H=H, Hp=_round_up(H, th), th=th, tm_max=64,
                compute_dtype=compute_dtype, vmem_limit=vmem_limit)


def prepare_mlp_weights(w_fc, b_fc, w_proj, b_proj, plan):
    """Pad the hidden dim and cast to the MXU compute dtype ONCE.

    Hoisted out of the per-call path so forward() does not re-read / re-write
    the full weight matrices in HBM on every call.
    """
    C, H = w_fc.shape
    Hp = plan["Hp"]
    cdt = plan["compute_dtype"]
    if Hp > H:
        w_fc = jnp.pad(w_fc, ((0, 0), (0, Hp - H)))
        b_fc = jnp.pad(b_fc, ((0, Hp - H),))
        w_proj = jnp.pad(w_proj, ((0, Hp - H), (0, 0)))
    return (w_fc.astype(cdt),
            b_fc.reshape(1, Hp).astype(jnp.float32),
            w_proj.astype(cdt),
            b_proj.reshape(1, C).astype(jnp.float32))


# ------------------------------ forward --------------------------------------


def mlp_forward(x, weights, plan):
    """x: (B, T, C); weights: output of prepare_mlp_weights. Returns (B, T, C)."""
    w_fc_c, b_fc2, w_proj_c, b_proj2 = weights
    B, T, C = x.shape
    Hp = plan["Hp"]
    th = plan["th"]
    cdt = plan["compute_dtype"]
    out_dtype = x.dtype
    M = B * T

    # ---- M (token) tiling: multiples of 16 sublanes, padded up to the tile.
    tm = min(plan["tm_max"], _round_up(M, 16))
    # Megacore (v7x has 2 TensorCores): ensure the 'parallel' M axis has >= 2
    # tiles whenever the problem is big enough to split.
    if M >= 32 and _cdiv(M, tm) < 2:
        tm = max(16, _round_up(_cdiv(M, 2), 16))
    Mp = _round_up(M, tm)

    x2 = x.reshape(M, C)
    if Mp > M:
        x2 = jnp.pad(x2, ((0, Mp - M), (0, 0)))
    x2 = x2.astype(cdt)

    n_m_tiles = Mp // tm

    if plan["resident"]:
        grid = (n_m_tiles,)
        in_specs = [
            pl.BlockSpec((tm, C), lambda i: (i, 0)),   # x tile
            pl.BlockSpec((C, Hp), lambda i: (0, 0)),   # W_fc  (VMEM-resident)
            pl.BlockSpec((1, Hp), lambda i: (0, 0)),   # b_fc
            pl.BlockSpec((Hp, C), lambda i: (0, 0)),   # W_proj (VMEM-resident)
            pl.BlockSpec((1, C), lambda i: (0, 0)),    # b_proj
        ]
        out_specs = pl.BlockSpec((tm, C), lambda i: (i, 0))
        scratch_shapes = ()
        kernel = mlp_kernel_resident
        dim_sem = ("parallel",)
        weight_restreams = 1
    else:
        grid = (n_m_tiles, Hp // th)
        # TODO(synk): if profiling shows exposed weight DMA on this path, add
        # pipeline_mode=pl.Buffered(3) to the two weight BlockSpecs below.
        in_specs = [
            pl.BlockSpec((tm, C), lambda i, h: (i, 0)),  # x tile (revisit-resident)
            pl.BlockSpec((C, th), lambda i, h: (0, h)),  # W_fc chunk
            pl.BlockSpec((1, th), lambda i, h: (0, h)),  # b_fc chunk
            pl.BlockSpec((th, C), lambda i, h: (h, 0)),  # W_proj chunk
            pl.BlockSpec((1, C), lambda i, h: (0, 0)),   # b_proj (invariant)
        ]
        out_specs = pl.BlockSpec((tm, C), lambda i, h: (i, 0))
        scratch_shapes = (pltpu.VMEM((tm, C), jnp.float32),)
        kernel = mlp_kernel_htiled
        dim_sem = ("parallel", "arbitrary")
        weight_restreams = n_m_tiles  # weights re-streamed once per M tile

    nb = lambda a: int(a.size) * int(a.dtype.itemsize)
    weight_bytes = nb(w_fc_c) + nb(b_fc2) + nb(w_proj_c) + nb(b_proj2)
    cost = pl.CostEstimate(
        flops=4 * M * C * plan["H"],          # two matmuls, 2*M*C*H each
        transcendentals=M * plan["H"],        # one erf per hidden activation
        bytes_accessed=(nb(x2) + weight_restreams * weight_bytes
                        + Mp * C * int(jnp.dtype(out_dtype).itemsize)),
    )

    out = pl.pallas_call(
        kernel,
        out_shape=jax.ShapeDtypeStruct((Mp, C), out_dtype),
        grid_spec=pltpu.PrefetchScalarGridSpec(
            num_scalar_prefetch=0,
            grid=grid,
            in_specs=in_specs,
            out_specs=out_specs,
            scratch_shapes=scratch_shapes,
        ),
        compiler_params=pltpu.CompilerParams(
            dimension_semantics=dim_sem,
            vmem_limit_bytes=plan["vmem_limit"],
        ),
        cost_estimate=cost,
    )(x2, w_fc_c, b_fc2, w_proj_c, b_proj2)

    return out[:M].reshape(B, T, C)


# ------------------------------- demo / test ---------------------------------


if __name__ == "__main__":
    # Small config: n_embd=64, hidden=4*n_embd=256, bias=True, dropout = eval identity.
    B, T, C = 2, 8, 64
    H = 4 * C

    key = jax.random.PRNGKey(0)
    kx, kw1, kb1, kw2, kb2 = jax.random.split(key, 5)
    x = jax.random.normal(kx, (B, T, C), dtype=jnp.float32)
    # Deterministic params; stored (in, out) for the kernel's x @ W convention.
    w_fc = jax.random.normal(kw1, (C, H), dtype=jnp.float32) * 0.02
    b_fc = jax.random.normal(kb1, (H,), dtype=jnp.float32) * 0.02
    w_proj = jax.random.normal(kw2, (H, C), dtype=jnp.float32) * 0.02
    b_proj = jax.random.normal(kb2, (C,), dtype=jnp.float32) * 0.02

    # Reference in plain JAX (same semantics as the PyTorch module in eval mode).
    h_ref = jax.nn.gelu(x.reshape(-1, C) @ w_fc + b_fc, approximate=False)
    y_ref = (h_ref @ w_proj + b_proj).reshape(B, T, C)

    # 1) Strict f32 path (weight-resident fast path at these sizes).
    plan_f32 = plan_mlp(C, H, compute_dtype=jnp.float32)
    w_f32 = prepare_mlp_weights(w_fc, b_fc, w_proj, b_proj, plan_f32)
    y_f32 = mlp_forward(x, w_f32, plan_f32)
    jax.block_until_ready(y_f32)
    assert jnp.allclose(y_f32, y_ref, atol=1e-5, rtol=1e-5), "f32 resident path mismatch"

    # 2) Strict f32 path, forced H-tiled streaming kernel (exercises the reduction grid).
    plan_tiled = plan_mlp(C, H, compute_dtype=jnp.float32,
                          force_path="tiled", th_override=128)
    w_tiled = prepare_mlp_weights(w_fc, b_fc, w_proj, b_proj, plan_tiled)
    y_tiled = mlp_forward(x, w_tiled, plan_tiled)
    jax.block_until_ready(y_tiled)
    assert jnp.allclose(y_tiled, y_ref, atol=1e-5, rtol=1e-5), "f32 tiled path mismatch"

    # 3) Default fast path: bf16 MXU inputs, f32 accumulation (looser tolerance).
    #    Weight prep is done ONCE here (hoisted) and would be reused across calls.
    plan_bf16 = plan_mlp(C, H)
    w_bf16 = prepare_mlp_weights(w_fc, b_fc, w_proj, b_proj, plan_bf16)
    y_bf16 = mlp_forward(x, w_bf16, plan_bf16)
    jax.block_until_ready(y_bf16)
    assert jnp.allclose(y_bf16, y_ref, atol=5e-3, rtol=5e-2), "bf16 path mismatch"

    print("KERNEL_OK")
</pallas_src>

<mosaic_0001>
module attributes {stable_mosaic.version = 11 : i64} {
  func.func @mlp_kernel_resident(%arg0: i32, %arg1: memref<16x64xf32, #tpu.memory_space<vmem>>, %arg2: memref<64x256xf32, #tpu.memory_space<vmem>>, %arg3: memref<1x256xf32, #tpu.memory_space<vmem>>, %arg4: memref<256x64xf32, #tpu.memory_space<vmem>>, %arg5: memref<1x64xf32, #tpu.memory_space<vmem>>, %arg6: memref<16x64xf32, #tpu.memory_space<vmem>>) attributes {dimension_semantics = [#tpu.dimension_semantics<parallel>], iteration_bounds = array<i64: 1>, scalar_prefetch = 0 : i64, scratch_operands = 0 : i64, tpu.core_type = #tpu.core_type<tc>, window_params = [{transform_indices = @transform_0, window_bounds = array<i64: 16, 64>}, {pipeline_mode = #tpu.pipeline_mode<synchronous>, transform_indices = @transform_1, window_bounds = array<i64: 64, 256>}, {pipeline_mode = #tpu.pipeline_mode<synchronous>, transform_indices = @transform_2, window_bounds = array<i64: 1, 256>}, {pipeline_mode = #tpu.pipeline_mode<synchronous>, transform_indices = @transform_3, window_bounds = array<i64: 256, 64>}, {pipeline_mode = #tpu.pipeline_mode<synchronous>, transform_indices = @transform_4, window_bounds = array<i64: 1, 64>}, {transform_indices = @transform_5, window_bounds = array<i64: 16, 64>}]} {
    %c0 = arith.constant 0 : index
    %c0_0 = arith.constant 0 : index
    %0 = vector.load %arg1[%c0, %c0_0] : memref<16x64xf32, #tpu.memory_space<vmem>>, vector<16x64xf32>
    %c0_1 = arith.constant 0 : index
    %c0_2 = arith.constant 0 : index
    %1 = vector.load %arg2[%c0_1, %c0_2] : memref<64x256xf32, #tpu.memory_space<vmem>>, vector<64x256xf32>
    %cst = arith.constant dense<0.000000e+00> : vector<16x256xf32>
    %2 = tpu.matmul %0, %1, %cst {dimension_numbers = #tpu.dot_dimension_numbers<[1], [0], [0], [1], [0, 0, 1, 1], [], []>} : vector<16x64xf32>, vector<64x256xf32>, vector<16x256xf32> -> vector<16x256xf32>
    %c0_3 = arith.constant 0 : index
    %c0_4 = arith.constant 0 : index
    %3 = vector.load %arg3[%c0_3, %c0_4] : memref<1x256xf32, #tpu.memory_space<vmem>>, vector<1x256xf32>
    %4 = vector.broadcast %3 : vector<1x256xf32> to vector<16x256xf32>
    %5 = arith.addf %2, %4 : vector<16x256xf32>
    %cst_5 = arith.constant 5.000000e-01 : f32
    %6 = vector.broadcast %cst_5 : f32 to vector<16x256xf32>
    %7 = arith.mulf %6, %5 : vector<16x256xf32>
    %cst_6 = arith.constant 0.707106769 : f32
    %8 = vector.broadcast %cst_6 : f32 to vector<16x256xf32>
    %9 = arith.mulf %5, %8 : vector<16x256xf32>
    %10 = math.erf %9 : vector<16x256xf32>
    %cst_7 = arith.constant 1.000000e+00 : f32
    %11 = vector.broadcast %cst_7 : f32 to vector<16x256xf32>
    %12 = arith.addf %11, %10 : vector<16x256xf32>
    %13 = arith.mulf %7, %12 : vector<16x256xf32>
    %c0_8 = arith.constant 0 : index
    %c0_9 = arith.constant 0 : index
    %14 = vector.load %arg4[%c0_8, %c0_9] : memref<256x64xf32, #tpu.memory_space<vmem>>, vector<256x64xf32>
    %cst_10 = arith.constant dense<0.000000e+00> : vector<16x64xf32>
    %15 = tpu.matmul %13, %14, %cst_10 {dimension_numbers = #tpu.dot_dimension_numbers<[1], [0], [0], [1], [0, 0, 1, 1], [], []>} : vector<16x256xf32>, vector<256x64xf32>, vector<16x64xf32> -> vector<16x64xf32>
    %c0_11 = arith.constant 0 : index
    %c0_12 = arith.constant 0 : index
    %16 = vector.load %arg5[%c0_11, %c0_12] : memref<1x64xf32, #tpu.memory_space<vmem>>, vector<1x64xf32>
    %17 = vector.broadcast %16 : vector<1x64xf32> to vector<16x64xf32>
    %18 = arith.addf %15, %17 : vector<16x64xf32>
    %c0_13 = arith.constant 0 : index
    %c0_14 = arith.constant 0 : index
    %19 = vector.load %arg6[%c0_13, %c0_14] : memref<16x64xf32, #tpu.memory_space<vmem>>, vector<16x64xf32>
    tpu.vector_store %arg6[%c0_13, %c0_14], %18 {strides = array<i32>} : memref<16x64xf32, #tpu.memory_space<vmem>>, vector<16x64xf32>,
    return
  }
  func.func @transform_0(%arg0: i32) -> (i32, i32) {
    %c0_i32 = arith.constant 0 : i32
    %c0_i32_0 = arith.constant 0 : i32
    return %arg0, %c0_i32 : i32, i32
  }
  func.func @transform_1(%arg0: i32) -> (i32, i32) {
    %c0_i32 = arith.constant 0 : i32
    %c0_i32_0 = arith.constant 0 : i32
    %c0_i32_1 = arith.constant 0 : i32
    return %c0_i32, %c0_i32_0 : i32, i32
  }
  func.func @transform_2(%arg0: i32) -> (i32, i32) {
    %c0_i32 = arith.constant 0 : i32
    %c0_i32_0 = arith.constant 0 : i32
    %c0_i32_1 = arith.constant 0 : i32
    return %c0_i32, %c0_i32_0 : i32, i32
  }
  func.func @transform_3(%arg0: i32) -> (i32, i32) {
    %c0_i32 = arith.constant 0 : i32
    %c0_i32_0 = arith.constant 0 : i32
    %c0_i32_1 = arith.constant 0 : i32
    return %c0_i32, %c0_i32_0 : i32, i32
  }
  func.func @transform_4(%arg0: i32) -> (i32, i32) {
    %c0_i32 = arith.constant 0 : i32
    %c0_i32_0 = arith.constant 0 : i32
    %c0_i32_1 = arith.constant 0 : i32
    return %c0_i32, %c0_i32_0 : i32, i32
  }
  func.func @transform_5(%arg0: i32) -> (i32, i32) {
    %c0_i32 = arith.constant 0 : i32
    %c0_i32_0 = arith.constant 0 : i32
    return %arg0, %c0_i32 : i32, i32
  }
}

</mosaic_0001>

<bundles_post_ra>
// kernel: tpu_custom_call.1
= control target key start
LH: loop header
LB: loop body
LE: loop exit
PB: predicated region body
PF: predicated region fallthrough
CT: control target
= control target key end

     0   :  { %v362_v4 = vmov 0.0   ;;  %s559_s0 = inlined_call_operand.vmem [shape: f32[16,64], index: 0, kind: input, shape index: {}]   ;;  %s560_s1 = inlined_call_operand.vmem [shape: f32[64,256], index: 1, kind: input, shape index: {}]   ;;  %s561_s2 = inlined_call_operand.vmem [shape: f32[1,256], index: 2, kind: input, shape index: {}]   ;;  %s562_s3 = inlined_call_operand.vmem [shape: f32[256,64], index: 3, kind: input, shape index: {}]   ;;  %s563_s4 = inlined_call_operand.vmem [shape: f32[1,64], index: 4, kind: input, shape index: {}]   ;;  %s564_s5 = inlined_call_operand.hbm [shape: f32[16,64], index: 5, kind: output, shape index: {}]  }
   0x1   :  { %v38_v0 = vld [vmem:[%s560_s1 + $0x78] sm:$0xff]  ;;  %v37_v1 = vld [vmem:[%s560_s1 + $0x70] sm:$0xff]  ;;  %v36_v2 = vld [vmem:[%s560_s1 + $0x68] sm:$0xff]  ;;  %122 = vmatprep.mubr.f32.mxu0 %v362_v4 }
   0x2   :  { %74 = vmatprep.subr.mxu0 %v38_v0  ;;  %v35_v3 = vld [vmem:[%s560_s1 + $0x60] sm:$0xff]  ;;  %v34_v5 = vld [vmem:[%s560_s1 + $0x58] sm:$0xff]  ;;  %v33_v6 = vld [vmem:[%s560_s1 + $0x50] sm:$0xff] }
   0x3   :  { %75 = vmatpush1.msra.mxu0 %v37_v1  ;;  %v32_v7 = vld [vmem:[%s560_s1 + $0x48] sm:$0xff]  ;;  %v31_v8 = vld [vmem:[%s560_s1 + $0x40] sm:$0xff]  ;;  %v30_v9 = vld [vmem:[%s560_s1 + $0x38] sm:$0xff] }
   0x4   :  { %76 = vmatprep.subr.mxu0 %v36_v2  ;;  %v186_v10 = vld [vmem:[%s562_s3 + $0xf8] sm:$0xff]  ;;  %v185_v12 = vld [vmem:[%s562_s3 + $0xf0] sm:$0xff]  ;;  %v28_v15 = vld [vmem:[%s560_s1 + $0x28] sm:$0xff] }
   0x5   :  { %77 = vmatpush1.msra.mxu0 %v35_v3  ;;  %v170_v11 = vld [vmem:[%s562_s3 + $0x78] sm:$0xff]  ;;  %v29_v13 = vld [vmem:[%s560_s1 + $0x30] sm:$0xff]  ;;  %290 = vmatprep.subr.mxu1 %v186_v10  ;;  %v184_v16 = vld [vmem:[%s562_s3 + $0xe8] sm:$0xff] }
   0x6   :  { %78 = vmatprep.subr.mxu0 %v34_v5  ;;  %v169_v14 = vld [vmem:[%s562_s3 + $0x70] sm:$0xff]  ;;  %291 = vmatpush3.msra.mxu1 %v170_v11 }
   0x7   :  { %79 = vmatpush1.msra.mxu0 %v33_v6 }
   0x8   :  { %80 = vmatprep.subr.mxu0 %v32_v7 }
   0x9   :  { %81 = vmatpush1.msra.mxu0 %v31_v8 }
   0xa   :  { %10 = vsyncpa [#allocation3], 0  ;;  %82 = vmatprep.subr.mxu0 %v30_v9  ;;  %v27_v17 = vld [vmem:[%s560_s1 + $0x20] sm:$0xff]  ;;  %292 = vmatprep.subr.mxu1 %v185_v12  ;;  %v168_v18 = vld [vmem:[%s562_s3 + $0x68] sm:$0xff]  ;;  %vm51_vm0 = vcmask 523264   ;;  %v41_v51 = vlaneseq  ;;  %s363_s16 = smov [#allocation2]  }
   0xb   :  { %83 = vmatpush1.msra.mxu0 %v29_v13  ;;  %v26_v19 = vld [vmem:[%s560_s1 + $0x18] sm:$0xff]  ;;  %293 = vmatpush3.msra.mxu1 %v169_v14  ;;  %v25_v20 = vld [vmem:[%s560_s1 + $0x10] sm:$0xff]  ;;  %v24_v21 = vld [vmem:[%s560_s1 + $0x8] sm:$0xff]  ;;  %s276_s17 = sshll.u32 %s363_s16, 4  ;;  %s277_s17 = int_to_ptr.vmem [resolvable:$true] %s276_s17 }
   0xc   :  { %84 = vmatprep.subr.mxu0 %v28_v15  ;;  %294 = vmatprep.subr.mxu1 %v184_v16  ;;  %v23_v22 = vld [vmem:[%s560_s1] sm:$0xff]  ;;  %v22_v24 = vld [vmem:[%s559_s0 + $0x8] sm:$0xff]  ;;  %v182_v27 = vld [vmem:[%s562_s3 + $0xd8] sm:$0xff]  ;;  %v42_v52 = vshrl.u32 %v41_v51, 7  ;;  %s340_s1 = scalar_lea.vmem %s277_s17, 256  ;;  %p345_p1 = scmp.lt.s32.totalorder %s277_s17, %s277_s17 }
   0xd   :  { %85 = vmatpush1.msra.mxu0 %v27_v17  ;;  %295 = vmatpush3.msra.mxu1 %v168_v18  ;;  %v21_v23 = vld [vmem:[%s559_s0] sm:$0xff]  ;;  %v166_v28 = vld [vmem:[%s562_s3 + $0x58] sm:$0xff]  ;;  %v181_v29 = vld [vmem:[%s562_s3 + $0xd0] sm:$0xff]  ;;  %p341_p0 = scmp.ne.s32.totalorder %s277_s17, %s340_s1  ;;  %p346_p2 = scmp.lt.s32.totalorder %s340_s1, %s340_s1 }
   0xe   :  { %86 = vmatprep.subr.mxu0 %v26_v19  ;;  %v183_v25 = vld [vmem:[%s562_s3 + $0xe0] sm:$0xff]  ;;  %v165_v30 = vld [vmem:[%s562_s3 + $0x50] sm:$0xff]  ;;  %v180_v31 = vld [vmem:[%s562_s3 + $0xc8] sm:$0xff]  ;;  %v43_v53 = vsub.s32 0, %v42_v52  ;;  %v47_v55 = vsub.s32 1, %v42_v52 }
   0xf   :  { %87 = vmatpush1.msra.mxu0 %v25_v20  ;;  %296 = vmatprep.subr.mxu1 %v183_v25  ;;  %v167_v26 = vld [vmem:[%s562_s3 + $0x60] sm:$0xff]  ;;  %v164_v32 = vld [vmem:[%s562_s3 + $0x48] sm:$0xff]  ;;  %v178_v35 = vld [vmem:[%s562_s3 + $0xb8] sm:$0xff]  ;;  %p347_p3 = por %p346_p2, %p345_p1 }
  0x10   :  { %88 = vmatprep.subr.mxu0 %v24_v21  ;;  %297 = vmatpush3.msra.mxu1 %v167_v26  ;;  %v179_v33 = vld [vmem:[%s562_s3 + $0xc0] sm:$0xff]  ;;  %v162_v36 = vld [vmem:[%s562_s3 + $0x38] sm:$0xff]  ;;  %v177_v37 = vld [vmem:[%s562_s3 + $0xb0] sm:$0xff] }
  0x11   :  { %89 = vmatpush1.msra.mxu0 %v23_v22  ;;  %298 = vmatprep.subr.mxu1 %v182_v27  ;;  %v163_v34 = vld [vmem:[%s562_s3 + $0x40] sm:$0xff]  ;;  %v161_v38 = vld [vmem:[%s562_s3 + $0x30] sm:$0xff]  ;;  %v176_v39 = vld [vmem:[%s562_s3 + $0xa8] sm:$0xff]  ;;  %p348_p4 = pnand %p347_p3, %p341_p0 }
  0x12   :  { %287 = vmatmul.mubr.msk.f32.vlgmr.msra.gmra.mxu0 %vm51_vm0, %v21_v23  ;;  %299 = vmatpush3.msra.mxu1 %v166_v28  ;;  %v160_v40 = vld [vmem:[%s562_s3 + $0x28] sm:$0xff]  ;;  %v175_v41 = vld [vmem:[%s562_s3 + $0xa0] sm:$0xff]  ;;  %v174_v43 = vld [vmem:[%s562_s3 + $0x98] sm:$0xff] }
  0x13   :  { %128 = vmatprep.mubr.f32.mxu0 %v362_v4  ;;  %300 = vmatprep.subr.mxu1 %v181_v29  ;;  %v159_v42 = vld [vmem:[%s562_s3 + $0x20] sm:$0xff]  ;;  %v158_v44 = vld [vmem:[%s562_s3 + $0x18] sm:$0xff]  ;;  %v173_v45 = vld [vmem:[%s562_s3 + $0x90] sm:$0xff] }
  0x14   :  { %301 = vmatpush3.msra.mxu1 %v165_v30  ;;  %v157_v46 = vld [vmem:[%s562_s3 + $0x10] sm:$0xff]  ;;  %v172_v47 = vld [vmem:[%s562_s3 + $0x88] sm:$0xff]  ;;  %v171_v49 = vld [vmem:[%s562_s3 + $0x80] sm:$0xff] }
  0x15   :  { %302 = vmatprep.subr.mxu1 %v180_v31  ;;  %v156_v48 = vld [vmem:[%s562_s3 + $0x8] sm:$0xff]  ;;  %v155_v50 = vld [vmem:[%s562_s3] sm:$0xff] }
  0x16   :  { %288 = vmatmul.mubr.msk.f32.gmra.mxu0 %vm51_vm0, %v22_v24  ;;  %303 = vmatpush3.msra.mxu1 %v164_v32  ;;  %v39_v54 = vld [vmem:[%s561_s2] sm:$0x3] }
  0x17   :  { %304 = vmatprep.subr.mxu1 %v179_v33  ;;  %v44_v56 = vrot.slane %v39_v54, %v43_v53  ;;  %v48_v57 = vrot.slane %v39_v54, %v47_v55  ;;  %v289_v23 = vld [vmem:[%s563_s4] ss:$0 sm:$0xff] }
  0x18   :  { %305 = vmatpush3.msra.mxu1 %v163_v34 }
  0x19   :  { %306 = vmatprep.subr.mxu1 %v178_v35 }
  0x1a   :  { %307 = vmatpush3.msra.mxu1 %v162_v36 }
  0x1b   :  { %308 = vmatprep.subr.mxu1 %v177_v37 }
  0x1c   :  { %309 = vmatpush3.msra.mxu1 %v161_v38 }
  0x1d   :  { %310 = vmatprep.subr.mxu1 %v176_v39 }
  0x1e   :  { %311 = vmatpush3.msra.mxu1 %v160_v40 }
  0x1f   :  { %312 = vmatprep.subr.mxu1 %v175_v41 }
  0x20   :  { %313 = vmatpush3.msra.mxu1 %v159_v42 }
  0x21   :  { %314 = vmatprep.subr.mxu1 %v174_v43 }
  0x22   :  { %315 = vmatpush3.msra.mxu1 %v158_v44 }
  0x23   :  { %316 = vmatprep.subr.mxu1 %v173_v45 }
  0x24   :  { %317 = vmatpush3.msra.mxu1 %v157_v46 }
  0x25   :  { %318 = vmatprep.subr.mxu1 %v172_v47 }
  0x26   :  { %319 = vmatpush3.msra.mxu1 %v156_v48 }
  0x27   :  { %320 = vmatprep.subr.mxu1 %v171_v49 }
  0x28   :  { %321 = vmatpush3.msra.mxu1 %v155_v50 }
  0xd2   :  { %v124_v58 = vpop.f32.mrf.mxu0 }
  0xd3   :  { %v125_v59 = vadd.f32 %v124_v58, %v44_v56 }
  0xd4   :  { %v126_v60 = vpop.f32.mrf.mxu0 }
  0xd5   :  { %v139_v61 = vmul.f32 0.70710677, %v125_v59  ;;  %v127_v62 = vadd.f32 %v126_v60, %v48_v57  ;;  %v135_v12 = vmul.f32 0.5, %v125_v59 }
  0xd6   :  { %v130_v63 = vpop.f32.mrf.mxu0 }
  0xd7   :  { %332 = verf.f32 %v139_v61  ;;  %v140_v0 = vmul.f32 0.70710677, %v127_v62  ;;  %v131_v1 = vadd.f32 %v130_v63, %v44_v56  ;;  %v136_v9 = vmul.f32 0.5, %v127_v62 }
  0xd8   :  { %v132_v2 = vpop.f32.mrf.mxu0 }
  0xd9   :  { %334 = verf.f32 %v140_v0  ;;  %v141_v3 = vmul.f32 0.70710677, %v131_v1  ;;  %v133_v4 = vadd.f32 %v132_v2, %v48_v57  ;;  %v137_v19 = vmul.f32 0.5, %v131_v1 }
  0xdb   :  { %336 = verf.f32 %v141_v3  ;;  %v142_v5 = vmul.f32 0.70710677, %v133_v4  ;;  %v138_v17 = vmul.f32 0.5, %v133_v4 }
  0xdd   :  { %338 = verf.f32 %v142_v5 }
  0xe4   :  { %v333_v6 = vpop.eup %332 }
  0xe5   :  { %v147_v8 = vadd.f32 1.0, %v333_v6 }
  0xe6   :  { %v335_v7 = vpop.eup %334 }
  0xe7   :  { %v148_v10 = vadd.f32 1.0, %v335_v7  ;;  %v151_v15 = vmul.f32 %v147_v8, %v135_v12 }
  0xe8   :  { %v337_v11 = vpop.eup %336 }
  0xe9   :  { %v152_v13 = vmul.f32 %v148_v10, %v136_v9  ;;  %v149_v16 = vadd.f32 1.0, %v337_v11 }
  0xea   :  { %v339_v14 = vpop.eup %338 }
  0xeb   :  { %258 = vmatprep.mubr.f32.mxu1 %v152_v13  ;;  %v150_v18 = vadd.f32 1.0, %v339_v14  ;;  %v153_v21 = vmul.f32 %v149_v16, %v137_v19 }
  0xec   :  { %259 = vmatmul.mubr.f32.vlgmr.msra.gmra.mxu1 %v151_v15 }
  0xed   :  { %v154_v20 = vmul.f32 %v150_v18, %v138_v17 }
  0xef   :  { %263 = vmatprep.mubr.f32.mxu1 %v154_v20 }
  0xf0   :  { %264 = vmatmul.mubr.f32.gmra.mxu1 %v153_v21 }
 0x1ac   :  { %v322_v22 = vpop.f32.mrf.mxu1 }
 0x1ae   :  { %v323_v24 = vpop.f32.mrf.mxu1 }
 0x1af   :  { %v324_v25 = vadd.f32 %v323_v24, %v322_v22 }
 0x1b0   :  { %v325_v26 = vpop.f32.mrf.mxu1 }
 0x1b1   :  { %v261_v27 = vadd.f32 %v324_v25, %v289_v23 }
 0x1b2   :  { %v326_v28 = vpop.f32.mrf.mxu1 }
 0x1b3   :  { %269 = vst.msk [vmem:[#allocation2] sm:$0xff] %vm51_vm0, %v261_v27  ;;  %v327_v29 = vadd.f32 %v326_v28, %v325_v26 }
 0x1b5   :  { %v266_v30 = vadd.f32 %v327_v29, %v289_v23 }
 0x1b7   :  { %270 = vst.msk [vmem:[#allocation2 + $0x8] sm:$0xff] %vm51_vm0, %v266_v30 }
 0x1b8   :  { %351 = shalt.err (!%p348_p4)
}
 0x1b9   :  { %s364_s4 = smov 128   ;;  %s365_s18 = smov 8  }
 0x1ba   :  { %282 = dma.vmem_to_hbm [thread:$0]  %s277_s17, 256, %s564_s5, [#allocation3], %s364_s4, %s364_s4, %s365_s18  }
 0x1bb   :  { %360 = dma.done.wait [#allocation3], 256  }
 0x1bc   :  { %361 = vsyncadd [#allocation3], 4294967040 }
 0x1bd   :  { %286 = vsyncpa [#allocation3], 1 }

</bundles_post_ra>
